<compile_context>
chip_gen: v5e
topology: v5e:2x2
jax: 0.10.0
libtpu: 0.0.40
codegen_flags: <defaults>
</compile_context>

<pallas_src>
import jax
import jax.numpy as jnp
from jax.experimental import pallas as pl
from jax.experimental.pallas import tpu as pltpu

D_IN = 6          # logical input features
D_IN_PAD = 8      # sublane-aligned K for first matmul
H = 30            # hidden width
D_OUT = 100       # logical output features
D_OUT_PAD = 128   # lane-dense output width (unmasked stores)
TM_MAX = 1024     # max row tile (multiple of 8); ~2 MiB double-buffered VMEM footprint


def _mlp_kernel(x_ref, w1_ref, b1_ref, w2_ref, b2_ref, w3_ref, b3_ref, o_ref):
    # Whole 3-layer MLP hot path on one (TM, *) row tile.
    x = x_ref[...]                                                    # (TM, 8)
    h1 = jnp.dot(x, w1_ref[...], preferred_element_type=jnp.float32) + b1_ref[...]
    h1 = jax.nn.softplus(h1)                                          # (TM, 30)
    h2 = jnp.dot(h1, w2_ref[...], preferred_element_type=jnp.float32) + b2_ref[...]
    h2 = jax.nn.softplus(h2)                                          # (TM, 30)
    o = jnp.dot(h2, w3_ref[...], preferred_element_type=jnp.float32) + b3_ref[...]
    o_ref[...] = o.astype(o_ref.dtype)                                # (TM, 128), lane-dense


def decoder_forward(inp, params):
    """inp: [T, B, 6] float32 -> (px_mean [T, B, 50], px_logstd [T, B, 50])."""
    w1, b1, w2, b2, w3, b3 = params
    T, B, D = inp.shape
    assert D == D_IN
    N = T * B
    x2d = inp.reshape(N, D)

    # --- feature-dim padding: K 6 -> 8 (zero columns contribute nothing) ---
    x2d = jnp.pad(x2d, ((0, 0), (0, D_IN_PAD - D_IN)))
    w1p = jnp.pad(w1, ((0, D_IN_PAD - D_IN), (0, 0)))
    # --- output lane padding: 100 -> 128 (zero columns, sliced off below) ---
    w3p = jnp.pad(w3, ((0, 0), (0, D_OUT_PAD - D_OUT)))
    b3p = jnp.pad(b3, ((0, 0), (0, D_OUT_PAD - D_OUT)))

    # --- row tile: large to amortize per-step overhead, adapts down for tiny N ---
    n8 = ((N + 7) // 8) * 8
    tm = min(TM_MAX, n8)
    n_pad = ((N + tm - 1) // tm) * tm
    if n_pad != N:
        x2d = jnp.pad(x2d, ((0, n_pad - N), (0, 0)))

    grid = (n_pad // tm,)
    full_w = lambda i: (0, 0)  # weights/biases: one resident full-array block

    cost = pl.CostEstimate(
        flops=2 * n_pad * (D_IN_PAD * H + H * H + H * D_OUT_PAD),
        transcendentals=4 * n_pad * H,  # 2 softplus layers x 30 wide x (exp + log)
        bytes_accessed=n_pad * 4 * (D_IN_PAD + D_OUT_PAD),
    )

    out2d = pl.pallas_call(
        _mlp_kernel,
        out_shape=jax.ShapeDtypeStruct((n_pad, D_OUT_PAD), jnp.float32),
        grid_spec=pltpu.PrefetchScalarGridSpec(
            num_scalar_prefetch=0,
            grid=grid,
            in_specs=[
                pl.BlockSpec((tm, D_IN_PAD), lambda i: (i, 0)),   # x row tile
                pl.BlockSpec((D_IN_PAD, H), full_w),              # W1 (padded)
                pl.BlockSpec((1, H), full_w),                     # b1
                pl.BlockSpec((H, H), full_w),                     # W2
                pl.BlockSpec((1, H), full_w),                     # b2
                pl.BlockSpec((H, D_OUT_PAD), full_w),             # W3 (padded)
                pl.BlockSpec((1, D_OUT_PAD), full_w),             # b3 (padded)
            ],
            out_specs=pl.BlockSpec((tm, D_OUT_PAD), lambda i: (i, 0)),
        ),
        compiler_params=pltpu.CompilerParams(
            dimension_semantics=("parallel",)),
        cost_estimate=cost,
    )(x2d, w1p, b1, w2, b2, w3p, b3p)

    out = out2d[:N, :D_OUT].reshape(T, B, D_OUT)
    px_mean = out[..., :50]
    px_logstd = out[..., 50:]
    return px_mean, px_logstd


def init_params(key):
    """Deterministic init mimicking torch.nn.Linear default (uniform +/- 1/sqrt(fan_in))."""
    dims = [(6, 30), (30, 30), (30, 100)]
    params = []
    for i, (fan_in, fan_out) in enumerate(dims):
        kw, kb = jax.random.split(jax.random.fold_in(key, i))
        bound = 1.0 / jnp.sqrt(float(fan_in))
        w = jax.random.uniform(kw, (fan_in, fan_out), jnp.float32, -bound, bound)
        b = jax.random.uniform(kb, (1, fan_out), jnp.float32, -bound, bound)
        params += [w, b]
    return tuple(params)


def _reference_forward(inp, params):
    w1, b1, w2, b2, w3, b3 = params
    h = jax.nn.softplus(inp @ w1 + b1[0])
    h = jax.nn.softplus(h @ w2 + b2[0])
    o = h @ w3 + b3[0]
    return o[..., :50], o[..., 50:]


if __name__ == "__main__":
    key = jax.random.PRNGKey(0)
    k_in, k_p = jax.random.split(key)

    T, B = 8, 2  # small shapes consistent with 'T B 6' input convention
    inp = jax.random.normal(k_in, (T, B, 6), dtype=jnp.float32)
    params = init_params(k_p)

    px_mean, px_logstd = decoder_forward(inp, params)
    jax.block_until_ready((px_mean, px_logstd))

    # sanity check against pure-JAX reference
    ref_mean, ref_logstd = _reference_forward(inp, params)
    assert px_mean.shape == (T, B, 50) and px_logstd.shape == (T, B, 50)
    assert jnp.allclose(px_mean, ref_mean, atol=1e-5, rtol=1e-5)
    assert jnp.allclose(px_logstd, ref_logstd, atol=1e-5, rtol=1e-5)

    print("KERNEL_OK")
</pallas_src>

<mosaic_0001>
module attributes {stable_mosaic.version = 11 : i64} {
  func.func @_mlp_kernel(%arg0: i32, %arg1: memref<16x8xf32, #tpu.memory_space<vmem>>, %arg2: memref<8x30xf32, #tpu.memory_space<vmem>>, %arg3: memref<1x30xf32, #tpu.memory_space<vmem>>, %arg4: memref<30x30xf32, #tpu.memory_space<vmem>>, %arg5: memref<1x30xf32, #tpu.memory_space<vmem>>, %arg6: memref<30x128xf32, #tpu.memory_space<vmem>>, %arg7: memref<1x128xf32, #tpu.memory_space<vmem>>, %arg8: memref<16x128xf32, #tpu.memory_space<vmem>>) attributes {dimension_semantics = [#tpu.dimension_semantics<parallel>], iteration_bounds = array<i64: 1>, scalar_prefetch = 0 : i64, scratch_operands = 0 : i64, tpu.core_type = #tpu.core_type<tc>, window_params = [{transform_indices = @transform_0, window_bounds = array<i64: 16, 8>}, {pipeline_mode = #tpu.pipeline_mode<synchronous>, transform_indices = @transform_1, window_bounds = array<i64: 8, 30>}, {pipeline_mode = #tpu.pipeline_mode<synchronous>, transform_indices = @transform_2, window_bounds = array<i64: 1, 30>}, {pipeline_mode = #tpu.pipeline_mode<synchronous>, transform_indices = @transform_3, window_bounds = array<i64: 30, 30>}, {pipeline_mode = #tpu.pipeline_mode<synchronous>, transform_indices = @transform_4, window_bounds = array<i64: 1, 30>}, {pipeline_mode = #tpu.pipeline_mode<synchronous>, transform_indices = @transform_5, window_bounds = array<i64: 30, 128>}, {pipeline_mode = #tpu.pipeline_mode<synchronous>, transform_indices = @transform_6, window_bounds = array<i64: 1, 128>}, {transform_indices = @transform_7, window_bounds = array<i64: 16, 128>}]} {
    %c0 = arith.constant 0 : index
    %c0_0 = arith.constant 0 : index
    %0 = vector.load %arg1[%c0, %c0_0] : memref<16x8xf32, #tpu.memory_space<vmem>>, vector<16x8xf32>
    %c0_1 = arith.constant 0 : index
    %c0_2 = arith.constant 0 : index
    %1 = vector.load %arg2[%c0_1, %c0_2] : memref<8x30xf32, #tpu.memory_space<vmem>>, vector<8x30xf32>
    %cst = arith.constant dense<0.000000e+00> : vector<16x30xf32>
    %2 = tpu.matmul %0, %1, %cst {dimension_numbers = #tpu.dot_dimension_numbers<[1], [0], [0], [1], [0, 0, 1, 1], [], []>} : vector<16x8xf32>, vector<8x30xf32>, vector<16x30xf32> -> vector<16x30xf32>
    %c0_3 = arith.constant 0 : index
    %c0_4 = arith.constant 0 : index
    %3 = vector.load %arg3[%c0_3, %c0_4] : memref<1x30xf32, #tpu.memory_space<vmem>>, vector<1x30xf32>
    %4 = vector.broadcast %3 : vector<1x30xf32> to vector<16x30xf32>
    %5 = arith.addf %2, %4 : vector<16x30xf32>
    %cst_5 = arith.constant 0.000000e+00 : f32
    %6 = vector.broadcast %cst_5 : f32 to vector<16x30xf32>
    %7 = arith.maximumf %5, %6 : vector<16x30xf32>
    %8 = vector.broadcast %cst_5 : f32 to vector<16x30xf32>
    %9 = arith.subf %5, %8 : vector<16x30xf32>
    %10 = arith.cmpf one, %9, %9 : vector<16x30xf32>
    %11 = vector.broadcast %cst_5 : f32 to vector<16x30xf32>
    %12 = arith.addf %5, %11 : vector<16x30xf32>
    %13 = math.absf %9 : vector<16x30xf32>
    %cst_6 = arith.constant 0.000000e+00 : f32
    %14 = vector.broadcast %cst_6 : f32 to vector<16x30xf32>
    %15 = arith.subf %14, %13 : vector<16x30xf32>
    %16 = math.exp %15 : vector<16x30xf32>
    %17 = math.log1p %16 : vector<16x30xf32>
    %18 = arith.addf %7, %17 : vector<16x30xf32>
    %19 = arith.select %10, %12, %18 : vector<16x30xi1>, vector<16x30xf32>
    %c0_7 = arith.constant 0 : index
    %c0_8 = arith.constant 0 : index
    %20 = vector.load %arg4[%c0_7, %c0_8] : memref<30x30xf32, #tpu.memory_space<vmem>>, vector<30x30xf32>
    %cst_9 = arith.constant dense<0.000000e+00> : vector<16x30xf32>
    %21 = tpu.matmul %19, %20, %cst_9 {dimension_numbers = #tpu.dot_dimension_numbers<[1], [0], [0], [1], [0, 0, 1, 1], [], []>} : vector<16x30xf32>, vector<30x30xf32>, vector<16x30xf32> -> vector<16x30xf32>
    %c0_10 = arith.constant 0 : index
    %c0_11 = arith.constant 0 : index
    %22 = vector.load %arg5[%c0_10, %c0_11] : memref<1x30xf32, #tpu.memory_space<vmem>>, vector<1x30xf32>
    %23 = vector.broadcast %22 : vector<1x30xf32> to vector<16x30xf32>
    %24 = arith.addf %21, %23 : vector<16x30xf32>
    %cst_12 = arith.constant 0.000000e+00 : f32
    %25 = vector.broadcast %cst_12 : f32 to vector<16x30xf32>
    %26 = arith.maximumf %24, %25 : vector<16x30xf32>
    %27 = vector.broadcast %cst_12 : f32 to vector<16x30xf32>
    %28 = arith.subf %24, %27 : vector<16x30xf32>
    %29 = arith.cmpf one, %28, %28 : vector<16x30xf32>
    %30 = vector.broadcast %cst_12 : f32 to vector<16x30xf32>
    %31 = arith.addf %24, %30 : vector<16x30xf32>
    %32 = math.absf %28 : vector<16x30xf32>
    %cst_13 = arith.constant 0.000000e+00 : f32
    %33 = vector.broadcast %cst_13 : f32 to vector<16x30xf32>
    %34 = arith.subf %33, %32 : vector<16x30xf32>
    %35 = math.exp %34 : vector<16x30xf32>
    %36 = math.log1p %35 : vector<16x30xf32>
    %37 = arith.addf %26, %36 : vector<16x30xf32>
    %38 = arith.select %29, %31, %37 : vector<16x30xi1>, vector<16x30xf32>
    %c0_14 = arith.constant 0 : index
    %c0_15 = arith.constant 0 : index
    %39 = vector.load %arg6[%c0_14, %c0_15] : memref<30x128xf32, #tpu.memory_space<vmem>>, vector<30x128xf32>
    %cst_16 = arith.constant dense<0.000000e+00> : vector<16x128xf32>
    %40 = tpu.matmul %38, %39, %cst_16 {dimension_numbers = #tpu.dot_dimension_numbers<[1], [0], [0], [1], [0, 0, 1, 1], [], []>} : vector<16x30xf32>, vector<30x128xf32>, vector<16x128xf32> -> vector<16x128xf32>
    %c0_17 = arith.constant 0 : index
    %c0_18 = arith.constant 0 : index
    %41 = vector.load %arg7[%c0_17, %c0_18] : memref<1x128xf32, #tpu.memory_space<vmem>>, vector<1x128xf32>
    %42 = vector.broadcast %41 : vector<1x128xf32> to vector<16x128xf32>
    %43 = arith.addf %40, %42 : vector<16x128xf32>
    %c0_19 = arith.constant 0 : index
    %c0_20 = arith.constant 0 : index
    %44 = vector.load %arg8[%c0_19, %c0_20] : memref<16x128xf32, #tpu.memory_space<vmem>>, vector<16x128xf32>
    tpu.vector_store %arg8[%c0_19, %c0_20], %43 {strides = array<i32>} : memref<16x128xf32, #tpu.memory_space<vmem>>, vector<16x128xf32>,
    return
  }
  func.func @transform_0(%arg0: i32) -> (i32, i32) {
    %c0_i32 = arith.constant 0 : i32
    %c0_i32_0 = arith.constant 0 : i32
    return %arg0, %c0_i32 : i32, i32
  }
  func.func @transform_1(%arg0: i32) -> (i32, i32) {
    %c0_i32 = arith.constant 0 : i32
    %c0_i32_0 = arith.constant 0 : i32
    %c0_i32_1 = arith.constant 0 : i32
    return %c0_i32, %c0_i32_0 : i32, i32
  }
  func.func @transform_2(%arg0: i32) -> (i32, i32) {
    %c0_i32 = arith.constant 0 : i32
    %c0_i32_0 = arith.constant 0 : i32
    %c0_i32_1 = arith.constant 0 : i32
    return %c0_i32, %c0_i32_0 : i32, i32
  }
  func.func @transform_3(%arg0: i32) -> (i32, i32) {
    %c0_i32 = arith.constant 0 : i32
    %c0_i32_0 = arith.constant 0 : i32
    %c0_i32_1 = arith.constant 0 : i32
    return %c0_i32, %c0_i32_0 : i32, i32
  }
  func.func @transform_4(%arg0: i32) -> (i32, i32) {
    %c0_i32 = arith.constant 0 : i32
    %c0_i32_0 = arith.constant 0 : i32
    %c0_i32_1 = arith.constant 0 : i32
    return %c0_i32, %c0_i32_0 : i32, i32
  }
  func.func @transform_5(%arg0: i32) -> (i32, i32) {
    %c0_i32 = arith.constant 0 : i32
    %c0_i32_0 = arith.constant 0 : i32
    %c0_i32_1 = arith.constant 0 : i32
    return %c0_i32, %c0_i32_0 : i32, i32
  }
  func.func @transform_6(%arg0: i32) -> (i32, i32) {
    %c0_i32 = arith.constant 0 : i32
    %c0_i32_0 = arith.constant 0 : i32
    %c0_i32_1 = arith.constant 0 : i32
    return %c0_i32, %c0_i32_0 : i32, i32
  }
  func.func @transform_7(%arg0: i32) -> (i32, i32) {
    %c0_i32 = arith.constant 0 : i32
    %c0_i32_0 = arith.constant 0 : i32
    return %arg0, %c0_i32 : i32, i32
  }
}

</mosaic_0001>

<bundles_post_ra>
// kernel: tpu_custom_call.1
= control target key start
LH: loop header
LB: loop body
LE: loop exit
PB: predicated region body
PF: predicated region fallthrough
CT: control target
= control target key end

     0   :  { %12 = vsyncpa [#allocation3], 0  ;;  %s474_s0 = inlined_call_operand.vmem [shape: f32[16,8], index: 0, kind: input, shape index: {}]   ;;  %s475_s1 = inlined_call_operand.vmem [shape: f32[8,30], index: 1, kind: input, shape index: {}]   ;;  %s476_s2 = inlined_call_operand.vmem [shape: f32[1,30], index: 2, kind: input, shape index: {}]   ;;  %s477_s3 = inlined_call_operand.hbm [shape: f32[30,30], index: 3, kind: input, shape index: {}]   ;;  %s478_s4 = inlined_call_operand.vmem [shape: f32[1,30], index: 4, kind: input, shape index: {}]   ;;  %s479_s5 = inlined_call_operand.hbm [shape: f32[30,128], index: 5, kind: input, shape index: {}]   ;;  %s480_s6 = inlined_call_operand.vmem [shape: f32[1,128], index: 6, kind: input, shape index: {}]   ;;  %s481_s7 = inlined_call_operand.hbm [shape: f32[16,128], index: 7, kind: output, shape index: {}]  }
   0x1   :  { %13 = vsyncpa [#allocation6], 0 }
   0x2   :  { %14 = vsyncpa [#allocation4], 0  ;;  %s25_s26 = sshll.u32 %s477_s3, 4  ;;  %s386_s27 = smov [#allocation2]   ;;  %s26_s26 = int_to_ptr.hbm [resolvable:$true] %s25_s26 }
   0x3   :  { %s27_s28 = sshll.u32 %s386_s27, 4  ;;  %s40_s8 = sshll.u32 %s479_s5, 4  ;;  %s28_s28 = int_to_ptr.vmem [resolvable:$true] %s27_s28  ;;  %s41_s8 = int_to_ptr.hbm [resolvable:$true] %s40_s8 }
   0x4   :  { %s387_s9 = smov 128   ;;  %s388_s10 = smov 8  }
   0x5   :  { %33 = dma.hbm_to_vmem [thread:$0]  %s26_s26, 512, %s28_s28, [#allocation3], %s387_s9, %s387_s9, %s388_s10  }
   0x6   :  { %s389_s11 = smov [#allocation5]  }
   0x7   :  { %s42_s12 = sshll.u32 %s389_s11, 4  ;;  %s43_s12 = int_to_ptr.vmem [resolvable:$true] %s42_s12 }
   0x8   :  { %48 = dma.hbm_to_vmem [thread:$0]  %s41_s8, 512, %s43_s12, [#allocation6], %s387_s9, %s387_s9, %s388_s10  }
   0x9   :  { %380 = dma.done.wait [#allocation3], 512  }
   0xa   :  { %381 = vsyncadd [#allocation3], 4294966784 }
   0xb   :  { %382 = dma.done.wait [#allocation6], 512  }
   0xc   :  { %383 = vsyncadd [#allocation6], 4294966784  ;;  %vm66_vm0 = vcmask 64512   ;;  %v61_v0 = vld [vmem:[%s475_s1] sm:$0xff]  ;;  %v60_v2 = vld [vmem:[%s474_s0 + $0x8] sm:$0xff]  ;;  %vm147_vm1 = vcmask 1045504  }
   0xd   :  { %v59_v1 = vld [vmem:[%s474_s0] sm:$0xff]  ;;  %88 = vmatpush.msra.mxu0 %v61_v0  ;;  %v135_v3 = vld [vmem:[#allocation2 + $0x18] sm:$0x3f]  ;;  %v134_v4 = vld [vmem:[#allocation2 + $0x10] sm:$0xff]  ;;  %vm140_vm3 = vcmask 244736   ;;  %s390_s19 = smov [#allocation7]  }
   0xe   :  { %272 = vmatmul.msk.f32.vlgmr.msra.gmra.mxu0 %vm66_vm0, %v59_v1  ;;  %274 = vmatpush.msk.msra.mxu1 %vm147_vm1, %v135_v3  ;;  %v133_v5 = vld [vmem:[#allocation2 + $0x8] sm:$0xff]  ;;  %v132_v6 = vld [vmem:[#allocation2] sm:$0xff]  ;;  %v213_v42 = vld [vmem:[#allocation5 + $0x18] sm:$0x3f]  ;;  %s256_s20 = sshll.u32 %s390_s19, 4  ;;  %s258_s23 = sshll.u32 %s481_s7, 4  ;;  %s257_s20 = int_to_ptr.vmem [resolvable:$true] %s256_s20  ;;  %s259_s23 = int_to_ptr.hbm [resolvable:$true] %s258_s23 }
   0xf   :  { %280 = vmatpush.msk.msra.mxu3 %vm147_vm1, %v135_v3  ;;  %v289_v7 = vld [vmem:[%s476_s2] ss:$0 sm:$0xff]  ;;  %v212_v43 = vld [vmem:[#allocation5 + $0x10] sm:$0xff]  ;;  %277 = vmatpush.msk.msra.mxu2 %vm147_vm1, %v213_v42  ;;  %v211_v44 = vld [vmem:[#allocation5 + $0x8] sm:$0xff] }
  0x10   :  { %164 = vmatpush.msra.mxu1 %v134_v4  ;;  %v210_v45 = vld [vmem:[#allocation5] sm:$0xff] }
  0x11   :  { %281 = vmatpush.msra.mxu3 %v134_v4  ;;  %240 = vmatpush.msra.mxu2 %v212_v43  ;;  %v290_v46 = vld [vmem:[%s478_s4] ss:$0 sm:$0xff] }
  0x12   :  { %165 = vmatpush.msra.mxu1 %v133_v5 }
  0x13   :  { %282 = vmatpush.msra.mxu3 %v133_v5  ;;  %241 = vmatpush.msra.mxu2 %v211_v44 }
  0x14   :  { %166 = vmatpush.msra.mxu1 %v132_v6 }
  0x15   :  { %283 = vmatpush.msra.mxu3 %v132_v6  ;;  %242 = vmatpush.msra.mxu2 %v210_v45 }
  0x16   :  { %273 = vmatmul.msk.f32.gmra.mxu0 %vm66_vm0, %v60_v2 }
  0x8b   :  { %v90_v8 = vpop.f32.mrf.mxu0 }
  0x8c   :  { %v91_v9 = vadd.f32 %v289_v7, %v90_v8 }
  0x8e   :  { %v102_v10 = vand.u32 2147483647, %v91_v9  ;;  %v96_v29 = vmax.f32 %v91_v9, 0.0  ;;  %vm98_vm4 = vcmp.ne.f32.partialorder %v91_v9, %v91_v9 }
  0x90   :  { %v104_v11 = vsub.f32 0.0, %v102_v10 }
  0x92   :  { %v106_v12 = vmul.f32 1.442695, %v104_v11 }
  0x93   :  { %v93_v13 = vpop.f32.mrf.mxu0 }
  0x94   :  { %292 = vpow2.f32 %v106_v12  ;;  %v94_v14 = vadd.f32 %v289_v7, %v93_v13 }
  0x96   :  { %v103_v15 = vand.u32 2147483647, %v94_v14  ;;  %v97_v38 = vmax.f32 %v94_v14, 0.0  ;;  %vm99_vm6 = vcmp.ne.f32.partialorder %v94_v14, %v94_v14 }
  0x98   :  { %v105_v16 = vsub.f32 0.0, %v103_v15 }
  0x9a   :  { %v293_v17 = vpop.eup %292  ;;  %v108_v18 = vmul.f32 1.442695, %v105_v16 }
  0x9b   :  { %v110_v19 = vadd.f32 1.0, %v293_v17  ;;  %v113_v20 = vmul.f32 -0.5, %v293_v17  ;;  %v116_v22 = vand.u32 2147483647, %v293_v17 }
  0x9c   :  { %294 = vpow2.f32 %v108_v18 }
  0x9d   :  { %296 = vlog2.f32 %v110_v19  ;;  %v114_v21 = vadd.f32 1.0, %v113_v20  ;;  %vm117_vm2 = vcmp.lt.f32.partialorder %v116_v22, 0.0004427343 }
  0x9f   :  { %v115_v27 = vmul.f32 %v293_v17, %v114_v21  ;;  %v291_v17 = vld [vmem:[%s480_s6] ss:$0 sm:$0xff] }
  0xa2   :  { %v295_v23 = vpop.eup %294 }
  0xa3   :  { %v297_v24 = vpop.eup %296  ;;  %v119_v25 = vadd.f32 1.0, %v295_v23  ;;  %v122_v28 = vmul.f32 -0.5, %v295_v23  ;;  %v125_v34 = vand.u32 2147483647, %v295_v23 }
  0xa4   :  { %v112_v26 = vmul.f32 0.6931472, %v297_v24 }
  0xa5   :  { %298 = vlog2.f32 %v119_v25  ;;  %v123_v32 = vadd.f32 1.0, %v122_v28  ;;  %vm126_vm5 = vcmp.lt.f32.partialorder %v125_v34, 0.0004427343 }
  0xa6   :  { %v118_v30 = vsel %vm117_vm2, %v115_v27, %v112_v26 }
  0xa7   :  { %v128_v31 = vadd.f32 %v118_v30, %v96_v29  ;;  %v124_v37 = vmul.f32 %v295_v23, %v123_v32 }
  0xa9   :  { %v130_v33 = vsel %vm98_vm4, %v91_v9, %v128_v31 }
  0xaa   :  { %275 = vmatmul.msk.f32.vlgmr.msra.gmra.mxu1 %vm140_vm3, %v130_v33 }
  0xab   :  { %v299_v35 = vpop.eup %298 }
  0xac   :  { %v121_v36 = vmul.f32 0.6931472, %v299_v35 }
  0xae   :  { %v127_v39 = vsel %vm126_vm5, %v124_v37, %v121_v36 }
  0xaf   :  { %v129_v40 = vadd.f32 %v127_v39, %v97_v38 }
  0xb1   :  { %v131_v41 = vsel %vm99_vm6, %v94_v14, %v129_v40 }
  0xb2   :  { %276 = vmatmul.msk.f32.vlgmr.msra.gmra.mxu3 %vm140_vm3, %v131_v41 }
 0x127   :  { %v168_v47 = vpop.f32.mrf.mxu1 }
 0x128   :  { %v169_v48 = vadd.f32 %v290_v46, %v168_v47 }
 0x12a   :  { %v180_v49 = vand.u32 2147483647, %v169_v48  ;;  %v174_v1 = vmax.f32 %v169_v48, 0.0  ;;  %vm176_vm8 = vcmp.ne.f32.partialorder %v169_v48, %v169_v48 }
 0x12c   :  { %v182_v50 = vsub.f32 0.0, %v180_v49 }
 0x12e   :  { %v184_v51 = vmul.f32 1.442695, %v182_v50 }
 0x130   :  { %300 = vpow2.f32 %v184_v51 }
 0x135   :  { %v171_v52 = vpop.f32.mrf.mxu3 }
 0x136   :  { %v301_v53 = vpop.eup %300  ;;  %v172_v54 = vadd.f32 %v290_v46, %v171_v52 }
 0x137   :  { %v188_v55 = vadd.f32 1.0, %v301_v53  ;;  %v191_v57 = vmul.f32 -0.5, %v301_v53  ;;  %v194_v61 = vand.u32 2147483647, %v301_v53 }
 0x138   :  { %v181_v56 = vand.u32 2147483647, %v172_v54  ;;  %v175_v13 = vmax.f32 %v172_v54, 0.0  ;;  %vm177_vm10 = vcmp.ne.f32.partialorder %v172_v54, %v172_v54 }
 0x139   :  { %302 = vlog2.f32 %v188_v55  ;;  %v192_v60 = vadd.f32 1.0, %v191_v57  ;;  %vm195_vm7 = vcmp.lt.f32.partialorder %v194_v61, 0.0004427343 }
 0x13a   :  { %v183_v58 = vsub.f32 0.0, %v181_v56 }
 0x13b   :  { %v193_v0 = vmul.f32 %v301_v53, %v192_v60 }
 0x13c   :  { %v186_v59 = vmul.f32 1.442695, %v183_v58 }
 0x13e   :  { %304 = vpow2.f32 %v186_v59 }
 0x13f   :  { %v303_v62 = vpop.eup %302 }
 0x140   :  { %v190_v63 = vmul.f32 0.6931472, %v303_v62 }
 0x142   :  { %v196_v2 = vsel %vm195_vm7, %v193_v0, %v190_v63 }
 0x143   :  { %v206_v3 = vadd.f32 %v196_v2, %v174_v1 }
 0x144   :  { %v305_v4 = vpop.eup %304 }
 0x145   :  { %v208_v5 = vsel %vm176_vm8, %v169_v48, %v206_v3  ;;  %v197_v6 = vadd.f32 1.0, %v305_v4  ;;  %v200_v7 = vmul.f32 -0.5, %v305_v4  ;;  %v203_v9 = vand.u32 2147483647, %v305_v4 }
 0x146   :  { %278 = vmatmul.msk.f32.vlgmr.msra.gmra.mxu2 %vm140_vm3, %v208_v5 }
 0x147   :  { %306 = vlog2.f32 %v197_v6  ;;  %v201_v8 = vadd.f32 1.0, %v200_v7  ;;  %vm204_vm9 = vcmp.lt.f32.partialorder %v203_v9, 0.0004427343 }
 0x149   :  { %v202_v12 = vmul.f32 %v305_v4, %v201_v8 }
 0x14d   :  { %v307_v10 = vpop.eup %306 }
 0x14e   :  { %v199_v11 = vmul.f32 0.6931472, %v307_v10 }
 0x150   :  { %v205_v14 = vsel %vm204_vm9, %v202_v12, %v199_v11 }
 0x151   :  { %v207_v15 = vadd.f32 %v205_v14, %v175_v13 }
 0x153   :  { %v209_v16 = vsel %vm177_vm10, %v172_v54, %v207_v15 }
 0x154   :  { %279 = vmatmul.msk.f32.gmra.mxu2 %vm140_vm3, %v209_v16 }
 0x1c9   :  { %v244_v18 = vpop.f32.mrf.mxu2 }
 0x1ca   :  { %v245_v19 = vadd.f32 %v291_v17, %v244_v18 }
 0x1cc   :  { %250 = vst [vmem:[#allocation7] sm:$0xff] %v245_v19 }
 0x1d7   :  { %v247_v20 = vpop.f32.mrf.mxu2 }
 0x1d8   :  { %v248_v21 = vadd.f32 %v291_v17, %v247_v20 }
 0x1da   :  { %251 = vst [vmem:[#allocation7 + $0x8] sm:$0xff] %v248_v21 }
 0x1db   :  { %264 = dma.vmem_to_hbm [thread:$0]  %s257_s20, 256, %s259_s23, [#allocation4], %s387_s9, %s387_s9, %s388_s10  }
 0x1dc   :  { %384 = dma.done.wait [#allocation4], 256  }
 0x1dd   :  { %385 = vsyncadd [#allocation4], 4294967040 }
 0x1de   :  { %269 = vsyncpa [#allocation3], 1 }
 0x1df   :  { %270 = vsyncpa [#allocation6], 1 }
 0x1e0   :  { %271 = vsyncpa [#allocation4], 1 }

</bundles_post_ra>
